<compile_context>
chip_gen: v7x
topology: tpu7x:2x2x1
jax: 0.10.0
libtpu: 0.0.40
codegen_flags: <defaults>
</compile_context>

<pallas_src>
import functools
import math

import jax
import jax.numpy as jnp
from jax.experimental import pallas as pl
from jax.experimental.pallas import tpu as pltpu

_BBOX_XFORM_CLIP = math.log(1000.0 / 16.0)   # torchvision-style dw/dh clamp


# ----------------------------------------------------------------------------
# Generation-aware sizing
# ----------------------------------------------------------------------------
def _vmem_limit_bytes():
    try:
        phys = int(pltpu.get_tpu_info().vmem_capacity_bytes)
    except Exception:
        phys = 64 << 20                       # conservative fallback
    if phys <= (64 << 20):                    # v7x: 64 MiB per TensorCore
        return 48 << 20                       # leave headroom for Mosaic scratch
    return 100 << 20                          # v5e / v6e: 128 MiB physical


_VMEM_LIMIT = _vmem_limit_bytes()


def _detect_pair_taps():
    # v6e/v7x MXUs are 2x256x256: pair 3x3 taps so each matmul has K=256.
    # v5e (4x128x128) is already ideal at K=128.
    try:
        info = pltpu.get_tpu_info()
        txt = (str(getattr(info, "chip_version", "")) +
               str(getattr(info, "chip_name", ""))).lower()
        if "5" in txt:
            return False
        return True
    except Exception:
        return True


_PAIR_TAPS = _detect_pair_taps()


def _round_up(a, b):
    return (a + b - 1) // b * b


def _pick_tm(m0, k, n_out, x_bytes=2, o_bytes=4):
    """M-tile for a [M,K]@[K,N] matmul sized from real per-tile bytes."""
    budget = max(_VMEM_LIMIT // 3, 4 << 20)
    per_row = 2 * (k * x_bytes + n_out * o_bytes)       # double-buffered in/out
    tm = budget // max(per_row, 1)
    tm = int(min(tm, 4096, _round_up(m0, 8)))
    tm = max(8, tm - (tm % 8))
    return tm


def _pick_conv_tile_h(fh, fw, c, head_p):
    """Output-row tile for the fused RPN conv: halo'd input + f32 acc + bf16
    relu + head output (double-buffered) must fit the VMEM budget."""
    budget = max(_VMEM_LIMIT // 3, 2 << 20)
    per_row = fw * c * (2 + 4 + 2) + fw * head_p * 8 + (fw + 2) * c * 2
    th_max = max(1, int(budget // per_row))
    if fh >= 16:
        th_max = min(th_max, fh // 2)   # >=2 row tiles so megacore can split
    th_max = min(th_max, fh)
    for th in range(th_max, 0, -1):
        if fh % th == 0 and ((th * fw) % 8 == 0 or th == fh):
            return th
    return fh


# ----------------------------------------------------------------------------
# Pallas kernels
# ----------------------------------------------------------------------------
def _linear_kernel(x_ref, w_ref, b_ref, o_ref, *, activation):
    acc = jnp.dot(x_ref[...], w_ref[...], preferred_element_type=jnp.float32)
    acc = acc + b_ref[...]
    if activation == "relu":
        acc = jnp.maximum(acc, 0.0)
    o_ref[...] = acc.astype(o_ref.dtype)


def pallas_linear(x, w, b, activation=None, out_dtype=jnp.float32):
    """y = act(x @ w + b); bf16 operands, f32 MXU accumulation, ragged M tiles."""
    m0, k = x.shape
    n = w.shape[1]
    tm = _pick_tm(m0, k, n, o_bytes=jnp.dtype(out_dtype).itemsize)
    return pl.pallas_call(
        functools.partial(_linear_kernel, activation=activation),
        out_shape=jax.ShapeDtypeStruct((m0, n), out_dtype),
        grid=(pl.cdiv(m0, tm),),
        in_specs=[
            pl.BlockSpec((tm, k), lambda i: (i, 0)),
            pl.BlockSpec((k, n), lambda i: (0, 0)),
            pl.BlockSpec((1, n), lambda i: (0, 0)),
        ],
        out_specs=pl.BlockSpec((tm, n), lambda i: (i, 0)),
        compiler_params=pltpu.CompilerParams(
            dimension_semantics=("parallel",),
            vmem_limit_bytes=_VMEM_LIMIT),
    )(x.astype(jnp.bfloat16), w.astype(jnp.bfloat16),
      b.reshape(1, n).astype(jnp.float32))


def _rpn_conv_head_kernel(x_hbm, w_ref, b_ref, hw_ref, hb_ref, o_ref,
                          xbuf, sem, *, th, out_w, cin, pair_taps):
    """Row-tiled 3x3/s1 conv (halo DMA) + bias + ReLU + fused 1x1 RPN head."""
    n = pl.program_id(0)
    t = pl.program_id(1)
    # Halo'd row slab [t*th, t*th + th + 2) of the zero-padded feature map.
    # TODO(synk): double-buffer this halo DMA (prefetch next row tile) to hide
    #             the ~few-us copy behind the 9-tap matmuls.
    cp = pltpu.make_async_copy(x_hbm.at[n, pl.ds(t * th, th + 2)],
                               xbuf, sem.at[0])
    cp.start()
    cp.wait()

    L = th * out_w
    cout = w_ref.shape[-1]

    def patch(tap):
        di, dj = tap // 3, tap % 3
        return xbuf[di:di + th, dj:dj + out_w, :].reshape(L, cin)

    acc = jnp.zeros((L, cout), jnp.float32)
    if pair_taps:
        # K=256 matmuls for the 2x256x256 MXU on v6e/v7x.
        for tp in range(0, 8, 2):
            p = jnp.concatenate([patch(tp), patch(tp + 1)], axis=-1)
            acc += jnp.dot(p, w_ref[tp * cin:(tp + 2) * cin, :],
                           preferred_element_type=jnp.float32)
        acc += jnp.dot(patch(8), w_ref[8 * cin:9 * cin, :],
                       preferred_element_type=jnp.float32)
    else:
        for tap in range(9):
            acc += jnp.dot(patch(tap), w_ref[tap * cin:(tap + 1) * cin, :],
                           preferred_element_type=jnp.float32)

    feat = jnp.maximum(acc + b_ref[...], 0.0).astype(jnp.bfloat16)
    # Fused 1x1 RPN head: objectness (A lanes) + box deltas (4A lanes), 16 wide.
    head = jnp.dot(feat, hw_ref[...], preferred_element_type=jnp.float32)
    o_ref[...] = (head + hb_ref[...]).astype(o_ref.dtype)


def pallas_rpn_conv_head(feats, w9, b, hw, hb):
    """feats (N,FH,FW,C) -> (N, FH*FW, P) where P lanes = [obj(A) | deltas(4A) | pad]."""
    n, fh, fw, c = feats.shape
    p = hw.shape[1]
    x_pad = jnp.pad(feats.astype(jnp.bfloat16), ((0, 0), (1, 1), (1, 1), (0, 0)))
    th = _pick_conv_tile_h(fh, fw, c, p)
    tiles = fh // th
    L = th * fw
    return pl.pallas_call(
        functools.partial(_rpn_conv_head_kernel, th=th, out_w=fw, cin=c,
                          pair_taps=_PAIR_TAPS),
        out_shape=jax.ShapeDtypeStruct((n, fh * fw, p), jnp.float32),
        grid=(n, tiles),
        in_specs=[
            pl.BlockSpec(memory_space=pl.ANY),                     # padded feats (HBM)
            pl.BlockSpec((9 * c, c), lambda i, j: (0, 0)),         # conv weights
            pl.BlockSpec((1, c), lambda i, j: (0, 0)),             # conv bias
            pl.BlockSpec((c, p), lambda i, j: (0, 0)),             # fused head weights
            pl.BlockSpec((1, p), lambda i, j: (0, 0)),             # fused head bias
        ],
        out_specs=pl.BlockSpec((None, L, p), lambda i, j: (i, j, 0)),
        scratch_shapes=[
            pltpu.VMEM((th + 2, fw + 2, c), jnp.bfloat16),         # halo'd input tile
            pltpu.SemaphoreType.DMA((1,)),
        ],
        compiler_params=pltpu.CompilerParams(
            dimension_semantics=("parallel", "parallel"),
            vmem_limit_bytes=_VMEM_LIMIT),
    )(x_pad, w9.astype(jnp.bfloat16), b.reshape(1, c).astype(jnp.float32),
      hw.astype(jnp.bfloat16), hb.reshape(1, p).astype(jnp.float32))


def _roi_mlp_kernel(x_ref, w1_ref, b1_ref, w2_ref, b2_ref, w3_ref, b3_ref,
                    head_ref, prob_ref, *, num_classes):
    h1 = jnp.dot(x_ref[...], w1_ref[...], preferred_element_type=jnp.float32)
    h1 = jnp.maximum(h1 + b1_ref[...], 0.0).astype(jnp.bfloat16)
    h2 = jnp.dot(h1, w2_ref[...], preferred_element_type=jnp.float32)
    h2 = jnp.maximum(h2 + b2_ref[...], 0.0).astype(jnp.bfloat16)
    head = jnp.dot(h2, w3_ref[...], preferred_element_type=jnp.float32) + b3_ref[...]
    head_ref[...] = head.astype(head_ref.dtype)
    # Fused softmax over the first `num_classes` (real) lanes of the padded head.
    col = jax.lax.broadcasted_iota(jnp.int32, head.shape, 1)
    masked = jnp.where(col < num_classes, head, -1e30)
    m = jnp.max(masked, axis=-1, keepdims=True)
    e = jnp.exp(masked - m)
    prob_ref[...] = e * pl.reciprocal(jnp.sum(e, axis=-1, keepdims=True),
                                      approx=True)


def pallas_roi_mlp_head(x, w1, b1, w2, b2, w3, b3, num_classes):
    """Fused fc1 -> fc2 -> (cls+reg) head -> softmax for the tiny RoI batch."""
    m, k1 = x.shape
    h1 = w1.shape[1]
    h2 = w2.shape[1]
    p = w3.shape[1]
    head, prob = pl.pallas_call(
        functools.partial(_roi_mlp_kernel, num_classes=num_classes),
        out_shape=(jax.ShapeDtypeStruct((m, p), jnp.float32),
                   jax.ShapeDtypeStruct((m, p), jnp.float32)),
        grid=(1,),
        in_specs=[
            pl.BlockSpec((m, k1), lambda i: (0, 0)),
            pl.BlockSpec((k1, h1), lambda i: (0, 0)),
            pl.BlockSpec((1, h1), lambda i: (0, 0)),
            pl.BlockSpec((h1, h2), lambda i: (0, 0)),
            pl.BlockSpec((1, h2), lambda i: (0, 0)),
            pl.BlockSpec((h2, p), lambda i: (0, 0)),
            pl.BlockSpec((1, p), lambda i: (0, 0)),
        ],
        out_specs=(pl.BlockSpec((m, p), lambda i: (0, 0)),
                   pl.BlockSpec((m, p), lambda i: (0, 0))),
        compiler_params=pltpu.CompilerParams(
            dimension_semantics=("arbitrary",),
            vmem_limit_bytes=_VMEM_LIMIT),
    )(x.astype(jnp.bfloat16),
      w1.astype(jnp.bfloat16), b1.reshape(1, -1).astype(jnp.float32),
      w2.astype(jnp.bfloat16), b2.reshape(1, -1).astype(jnp.float32),
      w3.astype(jnp.bfloat16), b3.reshape(1, -1).astype(jnp.float32))
    return head, prob


# ----------------------------------------------------------------------------
# JAX glue: stem im2col, tiny box decode, RoI pooling
# ----------------------------------------------------------------------------
def im2col(x_nhwc, ksize, stride, pad):
    # Only used for the 3-channel backbone stem (tiny expansion), in bf16.
    # TODO(synk): fuse the stride-2 stem into a Pallas conv like the RPN conv.
    n, h, w, c = x_nhwc.shape
    xp = jnp.pad(x_nhwc, ((0, 0), (pad, pad), (pad, pad), (0, 0)))
    out_h = (h + 2 * pad - ksize) // stride + 1
    out_w = (w + 2 * pad - ksize) // stride + 1
    cols = []
    for i in range(ksize):
        for j in range(ksize):
            cols.append(xp[:, i:i + stride * out_h:stride,
                           j:j + stride * out_w:stride, :])
    patches = jnp.concatenate(cols, axis=-1)
    return patches.reshape(n * out_h * out_w, ksize * ksize * c), out_h, out_w


def decode_boxes_jax(cx, cy, w, h, deltas, img_h, img_w,
                     weights=(1.0, 1.0, 1.0, 1.0)):
    """Tiny (top-K only) box decode in plain JAX; clamps dw/dh and clips to image."""
    wx, wy, ww, wh = weights
    dx = deltas[..., 0] / wx
    dy = deltas[..., 1] / wy
    dw = jnp.minimum(deltas[..., 2] / ww, _BBOX_XFORM_CLIP)
    dh = jnp.minimum(deltas[..., 3] / wh, _BBOX_XFORM_CLIP)
    pcx = dx * w + cx
    pcy = dy * h + cy
    pw = jnp.exp(dw) * w
    ph = jnp.exp(dh) * h
    x1 = jnp.clip(pcx - 0.5 * pw, 0.0, img_w)
    y1 = jnp.clip(pcy - 0.5 * ph, 0.0, img_h)
    x2 = jnp.clip(pcx + 0.5 * pw, 0.0, img_w)
    y2 = jnp.clip(pcy + 0.5 * ph, 0.0, img_h)
    return jnp.stack([x1, y1, x2, y2], axis=-1)


def roi_pool_nn(feat_hwc, boxes, out_size, scale_y, scale_x):
    # Nearest-neighbor RoI pooling (RoIAlign stand-in); data-dependent gather
    # stays in plain JAX (XLA gather).
    h, w, _ = feat_hwc.shape
    x1 = boxes[:, 0] * scale_x
    y1 = boxes[:, 1] * scale_y
    x2 = boxes[:, 2] * scale_x
    y2 = boxes[:, 3] * scale_y
    grid = (jnp.arange(out_size, dtype=jnp.float32) + 0.5) / out_size
    ys = y1[:, None] + grid[None, :] * (y2 - y1)[:, None]
    xs = x1[:, None] + grid[None, :] * (x2 - x1)[:, None]
    yi = jnp.clip(jnp.round(ys).astype(jnp.int32), 0, h - 1)
    xi = jnp.clip(jnp.round(xs).astype(jnp.int32), 0, w - 1)
    return feat_hwc[yi[:, :, None], xi[:, None, :], :]  # (R, S, S, C)


# ----------------------------------------------------------------------------
# FasterRCNNBase-equivalent model (inference path)
# ----------------------------------------------------------------------------
class FasterRCNNBasePallas:
    NUM_CLASSES = 5          # incl. background
    NUM_ANCHORS = 3
    TOPK = 8
    POOL = 7
    BACKBONE_C = 128         # lane-dense feature channels
    HIDDEN = 128
    RPN_HEAD_P = 16          # obj(3) + deltas(12) + 1 pad lane
    BOX_HEAD_P = 32          # cls(5) + reg(20) + pad lanes

    def __init__(self, key):
        ks = jax.random.split(key, 8)
        s = 0.01
        A, C, NC, H = self.NUM_ANCHORS, self.BACKBONE_C, self.NUM_CLASSES, self.HIDDEN
        PR, PB = self.RPN_HEAD_P, self.BOX_HEAD_P

        self.mean = jnp.array([0.485, 0.456, 0.406], jnp.float32)
        self.std = jnp.array([0.229, 0.224, 0.225], jnp.float32)

        # RPN head: objectness (A) + box deltas (4A; lane = A + 4a + c), 16 lanes.
        rpn_obj_w = s * jax.random.normal(ks[2], (C, A), jnp.float32)
        rpn_box_w = s * jax.random.normal(ks[3], (C, 4 * A), jnp.float32)
        rpn_head_w = jnp.zeros((C, PR), jnp.float32)
        rpn_head_w = rpn_head_w.at[:, :A].set(rpn_obj_w)
        rpn_head_w = rpn_head_w.at[:, A:A + 4 * A].set(rpn_box_w)

        # Box head: classifier (NC) + regressor (4*NC; lane = NC + 4*cls + c).
        cls_w = s * jax.random.normal(ks[6], (H, NC), jnp.float32)
        reg_w = s * jax.random.normal(ks[7], (H, NC * 4), jnp.float32)
        head_w = jnp.zeros((H, PB), jnp.float32)
        head_w = head_w.at[:, :NC].set(cls_w)
        head_w = head_w.at[:, NC:NC + 4 * NC].set(reg_w)

        bf16 = jnp.bfloat16
        self.p = {
            # 3x3/s2 stem weights, tap-major K=27 (normalize is NOT folded in).
            "backbone_w": (s * jax.random.normal(ks[0], (27, C), jnp.float32)).astype(bf16),
            "backbone_b": jnp.zeros((C,), jnp.float32),
            "rpn_conv_w": (s * jax.random.normal(ks[1], (9 * C, C), jnp.float32)).astype(bf16),
            "rpn_conv_b": jnp.zeros((C,), jnp.float32),
            "rpn_head_w": rpn_head_w.astype(bf16),                    # (C, 16)
            "rpn_head_b": jnp.zeros((PR,), jnp.float32),
            "fc1_w": (s * jax.random.normal(ks[4], (self.POOL * self.POOL * C, H),
                                            jnp.float32)).astype(bf16),
            "fc1_b": jnp.zeros((H,), jnp.float32),
            "fc2_w": (s * jax.random.normal(ks[5], (H, H), jnp.float32)).astype(bf16),
            "fc2_b": jnp.zeros((H,), jnp.float32),
            "head_w": head_w.astype(bf16),                            # (H, 32)
            "head_b": jnp.zeros((PB,), jnp.float32),
        }

    # ---- transform (ImageNet normalize; fused by XLA with the stem im2col) ---
    def transform(self, images):
        batched = jnp.stack(images)                      # (N, C, H, W)
        x = jnp.transpose(batched, (0, 2, 3, 1))         # NHWC
        x = (x - self.mean) / self.std                   # normalize-then-pad semantics
        n, h, w, _ = x.shape
        # TODO(synk): no resize / size-divisibility padding (GeneralizedRCNNTransform);
        #             inputs are assumed same-sized and stride-divisible.
        image_sizes = [(h, w)] * n
        return x.astype(jnp.bfloat16), image_sizes

    # ---- backbone ------------------------------------------------------------
    def backbone(self, x_nhwc):
        # 3x3/stride-2 stem as bf16 im2col + Pallas matmul (Cin=3 -> tiny expansion).
        patches, oh, ow = im2col(x_nhwc, ksize=3, stride=2, pad=1)    # (M, 27) bf16
        n = x_nhwc.shape[0]
        feat = pallas_linear(patches, self.p["backbone_w"], self.p["backbone_b"],
                             activation="relu", out_dtype=jnp.bfloat16)
        return feat.reshape(n, oh, ow, self.BACKBONE_C)

    # ---- rpn -----------------------------------------------------------------
    def rpn(self, feats, image_sizes):
        n, fh, fw, _ = feats.shape
        img_h, img_w = image_sizes[0]
        A, K = self.NUM_ANCHORS, self.TOPK

        # Fused conv3x3 + ReLU + 1x1 head: (N, FH*FW, 16), lanes = [obj | deltas].
        head = pallas_rpn_conv_head(feats, self.p["rpn_conv_w"], self.p["rpn_conv_b"],
                                    self.p["rpn_head_w"], self.p["rpn_head_b"])

        obj = head[..., :A].reshape(n, fh * fw * A)
        _, topi = jax.lax.top_k(obj, K)                  # ordering r = pos*A + a
        pos = topi // A                                  # (N, K) spatial index
        a_sel = topi % A                                 # (N, K) anchor index

        # Gather deltas only for the top-K proposals; decode them in plain JAX.
        sel = jnp.take_along_axis(head, pos[..., None], axis=1)       # (N, K, 16)
        lane = A + 4 * a_sel[..., None] + jnp.arange(4)[None, None, :]
        deltas = jnp.take_along_axis(sel, lane, axis=2)               # (N, K, 4)

        # Anchor geometry for the selected (pos, anchor) pairs.
        ratios = jnp.array([0.5, 1.0, 2.0], jnp.float32)
        size = 16.0
        ws = size * jnp.sqrt(1.0 / ratios)
        hs = size * jnp.sqrt(ratios)
        stride_y, stride_x = img_h / fh, img_w / fw
        row = pos // fw
        col = pos % fw
        cx = (col.astype(jnp.float32) + 0.5) * stride_x
        cy = (row.astype(jnp.float32) + 0.5) * stride_y
        proposals = decode_boxes_jax(cx, cy, ws[a_sel], hs[a_sel],
                                     deltas, img_h, img_w)            # (N, K, 4)
        # TODO(synk): RPN NMS + training losses not implemented (top-k only).
        return proposals, {}

    # ---- roi_heads -----------------------------------------------------------
    def roi_heads(self, feats, proposals, image_sizes):
        n, fh, fw, c = feats.shape
        img_h, img_w = image_sizes[0]
        K = proposals.shape[1]
        NC = self.NUM_CLASSES
        pooled = jnp.stack([
            roi_pool_nn(feats[i], proposals[i], self.POOL,
                        fh / float(img_h), fw / float(img_w))
            for i in range(n)
        ])                                                   # (N, K, P, P, C)
        x = pooled.reshape(n * K, self.POOL * self.POOL * c)

        head, probs = pallas_roi_mlp_head(
            x, self.p["fc1_w"], self.p["fc1_b"],
            self.p["fc2_w"], self.p["fc2_b"],
            self.p["head_w"], self.p["head_b"], NC)

        labels = jnp.argmax(probs[:, 1:NC], axis=-1) + 1     # best fg class
        scores = jnp.take_along_axis(probs, labels[:, None], axis=1)[:, 0]
        box_deltas = head[:, NC:NC + 4 * NC].reshape(n * K, NC, 4)
        d = jnp.take_along_axis(box_deltas, labels[:, None, None], axis=1)[:, 0, :]

        # Decode the N*K selected boxes in plain JAX with torchvision
        # bbox_reg_weights (10, 10, 5, 5).
        props = proposals.reshape(n * K, 4)
        pw = props[:, 2] - props[:, 0]
        ph = props[:, 3] - props[:, 1]
        pcx = props[:, 0] + 0.5 * pw
        pcy = props[:, 1] + 0.5 * ph
        boxes = decode_boxes_jax(pcx, pcy, pw, ph, d, img_h, img_w,
                                 weights=(10.0, 10.0, 5.0, 5.0)).reshape(n, K, 4)

        detections = [
            {"boxes": boxes[i],
             "labels": labels.reshape(n, K)[i],
             "scores": scores.reshape(n, K)[i]}
            for i in range(n)
        ]
        # TODO(synk): score-threshold filtering + per-class NMS omitted.
        return detections, {}

    # ---- transform.postprocess ----------------------------------------------
    def postprocess(self, detections, image_sizes, original_image_sizes):
        out = []
        for det, (h, w), (oh, ow) in zip(detections, image_sizes,
                                         original_image_sizes):
            sx = ow / float(w)
            sy = oh / float(h)
            scale = jnp.array([sx, sy, sx, sy], jnp.float32)
            out.append({"boxes": det["boxes"] * scale,
                        "labels": det["labels"],
                        "scores": det["scores"]})
        return out

    # ---- forward (inference; eager_outputs returns detections) --------------
    def __call__(self, images):
        original_image_sizes = [tuple(img.shape[-2:]) for img in images]
        x, image_sizes = self.transform(images)
        features = self.backbone(x)
        proposals, proposal_losses = self.rpn(features, image_sizes)
        detections, detector_losses = self.roi_heads(features, proposals,
                                                     image_sizes)
        detections = self.postprocess(detections, image_sizes,
                                      original_image_sizes)
        losses = {}
        losses.update(detector_losses)
        losses.update(proposal_losses)
        return detections  # eval mode


if __name__ == "__main__":
    key = jax.random.PRNGKey(0)
    k_model, k_img = jax.random.split(key)
    model = FasterRCNNBasePallas(k_model)

    # list of images, each (C, H, W) -- NCHW convention like PyTorch
    imgs = jax.random.uniform(k_img, (2, 3, 32, 32), jnp.float32)
    images = [imgs[0], imgs[1]]

    detections = model(images)
    for det in detections:
        for v in det.values():
            jax.block_until_ready(v)

    assert detections[0]["boxes"].shape == (FasterRCNNBasePallas.TOPK, 4)
    assert detections[0]["scores"].shape == (FasterRCNNBasePallas.TOPK,)
    assert bool(jnp.all(jnp.isfinite(detections[0]["boxes"])))
    print("KERNEL_OK")
</pallas_src>

<mosaic_0001>
module attributes {stable_mosaic.version = 11 : i64} {
  func.func @_linear_kernel(%arg0: i32, %arg1: memref<512x27xbf16, #tpu.memory_space<vmem>>, %arg2: memref<27x128xbf16, #tpu.memory_space<vmem>>, %arg3: memref<1x128xf32, #tpu.memory_space<vmem>>, %arg4: memref<512x128xbf16, #tpu.memory_space<vmem>>) attributes {dimension_semantics = [#tpu.dimension_semantics<parallel>], iteration_bounds = array<i64: 1>, scalar_prefetch = 0 : i64, scratch_operands = 0 : i64, tpu.core_type = #tpu.core_type<tc>, window_params = [{transform_indices = @transform_0, window_bounds = array<i64: 512, 27>}, {pipeline_mode = #tpu.pipeline_mode<synchronous>, transform_indices = @transform_1, window_bounds = array<i64: 27, 128>}, {pipeline_mode = #tpu.pipeline_mode<synchronous>, transform_indices = @transform_2, window_bounds = array<i64: 1, 128>}, {transform_indices = @transform_3, window_bounds = array<i64: 512, 128>}]} {
    %c0 = arith.constant 0 : index
    %c0_0 = arith.constant 0 : index
    %0 = vector.load %arg1[%c0, %c0_0] : memref<512x27xbf16, #tpu.memory_space<vmem>>, vector<512x27xbf16>
    %c0_1 = arith.constant 0 : index
    %c0_2 = arith.constant 0 : index
    %1 = vector.load %arg2[%c0_1, %c0_2] : memref<27x128xbf16, #tpu.memory_space<vmem>>, vector<27x128xbf16>
    %cst = arith.constant dense<0.000000e+00> : vector<512x128xf32>
    %2 = tpu.matmul %0, %1, %cst {dimension_numbers = #tpu.dot_dimension_numbers<[1], [0], [0], [1], [0, 0, 1, 1], [], []>} : vector<512x27xbf16>, vector<27x128xbf16>, vector<512x128xf32> -> vector<512x128xf32>
    %c0_3 = arith.constant 0 : index
    %c0_4 = arith.constant 0 : index
    %3 = vector.load %arg3[%c0_3, %c0_4] : memref<1x128xf32, #tpu.memory_space<vmem>>, vector<1x128xf32>
    %4 = vector.broadcast %3 : vector<1x128xf32> to vector<512x128xf32>
    %5 = arith.addf %2, %4 : vector<512x128xf32>
    %cst_5 = arith.constant 0.000000e+00 : f32
    %6 = vector.broadcast %cst_5 : f32 to vector<512x128xf32>
    %7 = arith.maximumf %5, %6 : vector<512x128xf32>
    %8 = arith.truncf %7 : vector<512x128xf32> to vector<512x128xbf16>
    %c0_6 = arith.constant 0 : index
    %c0_7 = arith.constant 0 : index
    %9 = vector.load %arg4[%c0_6, %c0_7] : memref<512x128xbf16, #tpu.memory_space<vmem>>, vector<512x128xbf16>
    tpu.vector_store %arg4[%c0_6, %c0_7], %8 {strides = array<i32>} : memref<512x128xbf16, #tpu.memory_space<vmem>>, vector<512x128xbf16>,
    return
  }
  func.func @transform_0(%arg0: i32) -> (i32, i32) {
    %c0_i32 = arith.constant 0 : i32
    %c0_i32_0 = arith.constant 0 : i32
    return %arg0, %c0_i32 : i32, i32
  }
  func.func @transform_1(%arg0: i32) -> (i32, i32) {
    %c0_i32 = arith.constant 0 : i32
    %c0_i32_0 = arith.constant 0 : i32
    %c0_i32_1 = arith.constant 0 : i32
    return %c0_i32, %c0_i32_0 : i32, i32
  }
  func.func @transform_2(%arg0: i32) -> (i32, i32) {
    %c0_i32 = arith.constant 0 : i32
    %c0_i32_0 = arith.constant 0 : i32
    %c0_i32_1 = arith.constant 0 : i32
    return %c0_i32, %c0_i32_0 : i32, i32
  }
  func.func @transform_3(%arg0: i32) -> (i32, i32) {
    %c0_i32 = arith.constant 0 : i32
    %c0_i32_0 = arith.constant 0 : i32
    return %arg0, %c0_i32 : i32, i32
  }
}

</mosaic_0001>

<bundles_post_ra>
// kernel: tpu_custom_call.1
= control target key start
LH: loop header
LB: loop body
LE: loop exit
PB: predicated region body
PF: predicated region fallthrough
CT: control target
= control target key end

     0   :  { %vm359_vm0 = vcmask 1044480   ;;  %vm360_vm1 = vcmask 1045504   ;;  %v1609_v2 = vmov 65535   ;;  %vm262_vm2 = vcmask 220160   ;;  %s1848_s0 = inlined_call_operand.vmem [shape: bf16[512,27], index: 0, kind: input, shape index: {}]   ;;  %s1849_s1 = inlined_call_operand.vmem [shape: bf16[27,128], index: 1, kind: input, shape index: {}]   ;;  %s1850_s2 = inlined_call_operand.vmem [shape: f32[1,128], index: 2, kind: input, shape index: {}]   ;;  %s1851_s3 = inlined_call_operand.hbm [shape: bf16[512,128], index: 3, kind: output, shape index: {}]  }
   0x1   :  { %v1551_v0 = vld [vmem:[%s1849_s1] sm:$0xff]   ;;  %v1552_v1 = vld [vmem:[%s1849_s1 + $0x8] sm:$0x3f]   ;;  %v361_v3 = vsel %vm359_vm0, 4294967295, %v1609_v2  ;;  %v1557_v10 = vld [vmem:[%s1848_s0 + $0x10] sm:$0xff]  }
   0x2   :  { %1475 = vmatprep.subr.bf16.mxu0 %v1551_v0  ;;  %1543 = vmatprep.subr.bf16.mxu1 %v1551_v0  ;;  %v1553_v4 = vld [vmem:[%s1848_s0] sm:$0xff]   ;;  %v362_v6 = vsel %vm360_vm1, %v361_v3, 0  ;;  %v1555_v8 = vld [vmem:[%s1848_s0 + $0x8] sm:$0xff]   ;;  %v1558_v11 = vld [vmem:[%s1848_s0 + $0x90] sm:$0xff]  }
   0x3   :  { %1476 = vmatpush3.bf16.msra.mxu0 %v1551_v0  ;;  %1545 = vmatpush3.bf16.msra.mxu1 %v1551_v0  ;;  %v1554_v5 = vld [vmem:[%s1848_s0 + $0x80] sm:$0xff]   ;;  %v364_v7 = vand.u32 %v1552_v1, %v362_v6  ;;  %v1556_v9 = vld [vmem:[%s1848_s0 + $0x88] sm:$0xff]   ;;  %v1559_v12 = vld [vmem:[%s1848_s0 + $0x18] sm:$0xff]  }
   0x4   :  { %1479 = vmatprep.mubr.msk.bf16.mxu0 %vm262_vm2, %v1553_v4  ;;  %1511 = vmatprep.mubr.msk.bf16.mxu1 %vm262_vm2, %v1554_v5  ;;  %v1560_v13 = vld [vmem:[%s1848_s0 + $0x98] sm:$0xff]   ;;  %v1561_v14 = vld [vmem:[%s1848_s0 + $0x20] sm:$0xff]   ;;  %v1563_v16 = vld [vmem:[%s1848_s0 + $0x28] sm:$0xff]  }
   0x5   :  { %1477 = vmatprep.subr.bf16.mxu0 %v364_v7  ;;  %1544 = vmatprep.subr.bf16.mxu1 %v364_v7  ;;  %v1562_v15 = vld [vmem:[%s1848_s0 + $0xa0] sm:$0xff]   ;;  %v1564_v17 = vld [vmem:[%s1848_s0 + $0xa8] sm:$0xff]   ;;  %v1565_v18 = vld [vmem:[%s1848_s0 + $0x30] sm:$0xff]  }
   0x6   :  { %v1566_v19 = vld [vmem:[%s1848_s0 + $0xb0] sm:$0xff]   ;;  %v1567_v20 = vld [vmem:[%s1848_s0 + $0x38] sm:$0xff]   ;;  %v1569_v22 = vld [vmem:[%s1848_s0 + $0x40] sm:$0xff]  }
   0x7   :  { %1478 = vmatpush3.bf16.msra.mxu0 %v364_v7  ;;  %1546 = vmatpush3.bf16.msra.mxu1 %v364_v7  ;;  %v1568_v21 = vld [vmem:[%s1848_s0 + $0xb8] sm:$0xff]   ;;  %v1570_v23 = vld [vmem:[%s1848_s0 + $0xc0] sm:$0xff]  }
   0xa   :  { %1480 = vmatmul.mubr.msk.bf16.vlgmr.msra.gmra.mrb[0].mxu0 %vm262_vm2, %v1555_v8  ;;  %1512 = vmatmul.mubr.msk.bf16.vlgmr.msra.gmra.mrb[0].mxu1 %vm262_vm2, %v1556_v9 }
   0xb   :  { %1483 = vmatprep.mubr.msk.bf16.mxu0 %vm262_vm2, %v1557_v10  ;;  %1515 = vmatprep.mubr.msk.bf16.mxu1 %vm262_vm2, %v1558_v11 }
  0x12   :  { %1484 = vmatmul.mubr.msk.bf16.gmra.mrb[4].mxu0 %vm262_vm2, %v1559_v12  ;;  %1516 = vmatmul.mubr.msk.bf16.gmra.mrb[4].mxu1 %vm262_vm2, %v1560_v13 }
  0x13   :  { %1487 = vmatprep.mubr.msk.bf16.mxu0 %vm262_vm2, %v1561_v14  ;;  %1519 = vmatprep.mubr.msk.bf16.mxu1 %vm262_vm2, %v1562_v15 }
  0x1a   :  { %1488 = vmatmul.mubr.msk.bf16.gmra.mrb[8].mxu0 %vm262_vm2, %v1563_v16  ;;  %1520 = vmatmul.mubr.msk.bf16.gmra.mrb[8].mxu1 %vm262_vm2, %v1564_v17 }
  0x1b   :  { %1491 = vmatprep.mubr.msk.bf16.mxu0 %vm262_vm2, %v1565_v18  ;;  %1523 = vmatprep.mubr.msk.bf16.mxu1 %vm262_vm2, %v1566_v19 }
  0x1c   :  { %8 = vsyncpa [#allocation3], 0  ;;  %v1571_v24 = vld [vmem:[%s1848_s0 + $0x48] sm:$0xff]   ;;  %v1573_v26 = vld [vmem:[%s1848_s0 + $0x50] sm:$0xff]  }
  0x1d   :  { %v1572_v25 = vld [vmem:[%s1848_s0 + $0xc8] sm:$0xff]   ;;  %v1574_v27 = vld [vmem:[%s1848_s0 + $0xd0] sm:$0xff]   ;;  %v1575_v28 = vld [vmem:[%s1848_s0 + $0x58] sm:$0xff]  }
  0x1e   :  { %v1576_v29 = vld [vmem:[%s1848_s0 + $0xd8] sm:$0xff]   ;;  %v1577_v30 = vld [vmem:[%s1848_s0 + $0x60] sm:$0xff]   ;;  %v1579_v32 = vld [vmem:[%s1848_s0 + $0x68] sm:$0xff]  }
  0x1f   :  { %v1578_v31 = vld [vmem:[%s1848_s0 + $0xe0] sm:$0xff]   ;;  %v1580_v33 = vld [vmem:[%s1848_s0 + $0xe8] sm:$0xff]   ;;  %v1581_v34 = vld [vmem:[%s1848_s0 + $0x70] sm:$0xff]  }
  0x20   :  { %v1582_v35 = vld [vmem:[%s1848_s0 + $0xf0] sm:$0xff]   ;;  %v1583_v36 = vld [vmem:[%s1848_s0 + $0x78] sm:$0xff]   ;;  %v1770_v38 = vld [vmem:[%s1850_s2] ss:$0 sm:$0xff] }
  0x21   :  { %v1584_v37 = vld [vmem:[%s1848_s0 + $0xf8] sm:$0xff]   ;;  %s1610_s0 = smov [#allocation2]  }
  0x22   :  { %1492 = vmatmul.mubr.msk.bf16.gmra.mrb[12].mxu0 %vm262_vm2, %v1567_v20  ;;  %1524 = vmatmul.mubr.msk.bf16.gmra.mrb[12].mxu1 %vm262_vm2, %v1568_v21  ;;  %s1044_s2 = sshll.u32 %s1610_s0, 4  ;;  %s1045_s2 = int_to_ptr.vmem [resolvable:$true] %s1044_s2 }
  0x23   :  { %1495 = vmatprep.mubr.msk.bf16.mxu0 %vm262_vm2, %v1569_v22  ;;  %1527 = vmatprep.mubr.msk.bf16.mxu1 %vm262_vm2, %v1570_v23  ;;  %s1585_s25 = scalar_lea.vmem %s1045_s2, 4096  ;;  %p1590_p1 = scmp.lt.s32.totalorder %s1045_s2, %s1045_s2 }
  0x24   :  { %p1586_p0 = scmp.ne.s32.totalorder %s1045_s2, %s1585_s25  ;;  %p1591_p2 = scmp.lt.s32.totalorder %s1585_s25, %s1585_s25 }
  0x26   :  { %p1592_p3 = por %p1591_p2, %p1590_p1 }
  0x28   :  { %p1593_p4 = pnand %p1592_p3, %p1586_p0 }
  0x2a   :  { %1496 = vmatmul.mubr.msk.bf16.gmra.mrb[16].mxu0 %vm262_vm2, %v1571_v24  ;;  %1528 = vmatmul.mubr.msk.bf16.gmra.mrb[16].mxu1 %vm262_vm2, %v1572_v25 }
  0x2b   :  { %1499 = vmatprep.mubr.msk.bf16.mxu0 %vm262_vm2, %v1573_v26  ;;  %1531 = vmatprep.mubr.msk.bf16.mxu1 %vm262_vm2, %v1574_v27 }
  0x32   :  { %1500 = vmatmul.mubr.msk.bf16.gmra.mrb[20].mxu0 %vm262_vm2, %v1575_v28  ;;  %1532 = vmatmul.mubr.msk.bf16.gmra.mrb[20].mxu1 %vm262_vm2, %v1576_v29 }
  0x33   :  { %1503 = vmatprep.mubr.msk.bf16.mxu0 %vm262_vm2, %v1577_v30  ;;  %1535 = vmatprep.mubr.msk.bf16.mxu1 %vm262_vm2, %v1578_v31 }
  0x3a   :  { %1504 = vmatmul.mubr.msk.bf16.gmra.mrb[24].mxu0 %vm262_vm2, %v1579_v32  ;;  %1536 = vmatmul.mubr.msk.bf16.gmra.mrb[24].mxu1 %vm262_vm2, %v1580_v33 }
  0x3b   :  { %1507 = vmatprep.mubr.msk.bf16.mxu0 %vm262_vm2, %v1581_v34  ;;  %1539 = vmatprep.mubr.msk.bf16.mxu1 %vm262_vm2, %v1582_v35 }
  0x42   :  { %1508 = vmatmul.mubr.msk.bf16.gmra.mrb[28].mxu0 %vm262_vm2, %v1583_v36  ;;  %1540 = vmatmul.mubr.msk.bf16.gmra.mrb[28].mxu1 %vm262_vm2, %v1584_v37 }
  0xdd   :  { %v1481_v39 = vpop.f32.mrb[0].mxu0  ;;  %v1513_v40 = vpop.f32.mrb[0].mxu1 }
  0xde   :  { %v409_v41 = vadd.f32 %v1481_v39, %v1770_v38  ;;  %v537_v42 = vadd.f32 %v1513_v40, %v1770_v38  ;;  %v400_v43 = vpop.f32.mrb[1].mxu0  ;;  %v528_v44 = vpop.f32.mrb[1].mxu1 }
  0xdf   :  { %v401_v45 = vadd.f32 %v1770_v38, %v400_v43  ;;  %v529_v46 = vadd.f32 %v1770_v38, %v528_v44  ;;  %v1482_v47 = vpop.f32.mrb[2].mxu0  ;;  %v1514_v48 = vpop.f32.mrb[2].mxu1 }
  0xe0   :  { %v412_v49 = vadd.f32 %v1482_v47, %v1770_v38  ;;  %v540_v50 = vadd.f32 %v1514_v48, %v1770_v38  ;;  %v403_v51 = vpop.f32.mrb[3].mxu0  ;;  %v531_v52 = vpop.f32.mrb[3].mxu1  ;;  %v657_v55 = vmax.f32 %v409_v41, 0.0  ;;  %v689_v56 = vmax.f32 %v537_v42, 0.0 }
  0xe1   :  { %v404_v53 = vadd.f32 %v1770_v38, %v403_v51  ;;  %v532_v54 = vadd.f32 %v1770_v38, %v531_v52  ;;  %v655_v59 = vmax.f32 %v401_v45, 0.0  ;;  %v687_v60 = vmax.f32 %v529_v46, 0.0 }
  0xe2   :  { %v658_v57 = vmax.f32 %v412_v49, 0.0  ;;  %v690_v58 = vmax.f32 %v540_v50, 0.0 }
  0xe3   :  { %v656_v61 = vmax.f32 %v404_v53, 0.0  ;;  %v688_v62 = vmax.f32 %v532_v54, 0.0 }
  0xe4   :  { %v1258_v63 = vpack.c.bf16 %v658_v57, %v657_v55  ;;  %v1338_v0 = vpack.c.bf16 %v690_v58, %v689_v56 }
  0xe5   :  { %v1253_v1 = vpack.c.bf16 %v656_v61, %v655_v59  ;;  %v1333_v2 = vpack.c.bf16 %v688_v62, %v687_v60  ;;  %v1485_v3 = vpop.f32.mrb[4].mxu0  ;;  %v1517_v4 = vpop.f32.mrb[4].mxu1 }
  0xe6   :  { %1410 = vst [vmem:[#allocation2 + $0x8] sm:$0xff] %v1258_v63   ;;  %1426 = vst [vmem:[#allocation2 + $0x88] sm:$0xff] %v1338_v0   ;;  %v425_v5 = vadd.f32 %v1485_v3, %v1770_v38  ;;  %v553_v6 = vadd.f32 %v1517_v4, %v1770_v38  ;;  %v416_v7 = vpop.f32.mrb[5].mxu0  ;;  %v544_v8 = vpop.f32.mrb[5].mxu1 }
  0xe7   :  { %1254 = vst [vmem:[#allocation2] sm:$0xff] %v1253_v1   ;;  %1425 = vst [vmem:[#allocation2 + $0x80] sm:$0xff] %v1333_v2   ;;  %v417_v9 = vadd.f32 %v1770_v38, %v416_v7  ;;  %v545_v10 = vadd.f32 %v1770_v38, %v544_v8  ;;  %v1486_v11 = vpop.f32.mrb[6].mxu0  ;;  %v1518_v12 = vpop.f32.mrb[6].mxu1 }
  0xe8   :  { %v428_v13 = vadd.f32 %v1486_v11, %v1770_v38  ;;  %v556_v14 = vadd.f32 %v1518_v12, %v1770_v38  ;;  %v419_v15 = vpop.f32.mrb[7].mxu0  ;;  %v547_v16 = vpop.f32.mrb[7].mxu1  ;;  %v661_v19 = vmax.f32 %v425_v5, 0.0  ;;  %v693_v20 = vmax.f32 %v553_v6, 0.0 }
  0xe9   :  { %v420_v17 = vadd.f32 %v1770_v38, %v419_v15  ;;  %v548_v18 = vadd.f32 %v1770_v38, %v547_v16  ;;  %v659_v23 = vmax.f32 %v417_v9, 0.0  ;;  %v691_v24 = vmax.f32 %v545_v10, 0.0 }
  0xea   :  { %v662_v21 = vmax.f32 %v428_v13, 0.0  ;;  %v694_v22 = vmax.f32 %v556_v14, 0.0 }
  0xeb   :  { %v660_v25 = vmax.f32 %v420_v17, 0.0  ;;  %v692_v26 = vmax.f32 %v548_v18, 0.0 }
  0xec   :  { %v1268_v27 = vpack.c.bf16 %v662_v21, %v661_v19  ;;  %v1348_v28 = vpack.c.bf16 %v694_v22, %v693_v20 }
  0xed   :  { %v1263_v29 = vpack.c.bf16 %v660_v25, %v659_v23  ;;  %v1343_v30 = vpack.c.bf16 %v692_v26, %v691_v24  ;;  %v1489_v31 = vpop.f32.mrb[8].mxu0  ;;  %v1521_v32 = vpop.f32.mrb[8].mxu1 }
  0xee   :  { %1412 = vst [vmem:[#allocation2 + $0x18] sm:$0xff] %v1268_v27   ;;  %1428 = vst [vmem:[#allocation2 + $0x98] sm:$0xff] %v1348_v28   ;;  %v441_v33 = vadd.f32 %v1489_v31, %v1770_v38  ;;  %v569_v34 = vadd.f32 %v1521_v32, %v1770_v38  ;;  %v432_v35 = vpop.f32.mrb[9].mxu0  ;;  %v560_v36 = vpop.f32.mrb[9].mxu1 }
  0xef   :  { %1411 = vst [vmem:[#allocation2 + $0x10] sm:$0xff] %v1263_v29   ;;  %1427 = vst [vmem:[#allocation2 + $0x90] sm:$0xff] %v1343_v30   ;;  %v433_v37 = vadd.f32 %v1770_v38, %v432_v35  ;;  %v561_v39 = vadd.f32 %v1770_v38, %v560_v36  ;;  %v1490_v40 = vpop.f32.mrb[10].mxu0  ;;  %v1522_v41 = vpop.f32.mrb[10].mxu1 }
  0xf0   :  { %v444_v42 = vadd.f32 %v1490_v40, %v1770_v38  ;;  %v572_v43 = vadd.f32 %v1522_v41, %v1770_v38  ;;  %v435_v44 = vpop.f32.mrb[11].mxu0  ;;  %v563_v45 = vpop.f32.mrb[11].mxu1  ;;  %v665_v48 = vmax.f32 %v441_v33, 0.0  ;;  %v697_v49 = vmax.f32 %v569_v34, 0.0 }
  0xf1   :  { %v436_v46 = vadd.f32 %v1770_v38, %v435_v44  ;;  %v564_v47 = vadd.f32 %v1770_v38, %v563_v45  ;;  %v663_v52 = vmax.f32 %v433_v37, 0.0  ;;  %v695_v53 = vmax.f32 %v561_v39, 0.0 }
  0xf2   :  { %v666_v50 = vmax.f32 %v444_v42, 0.0  ;;  %v698_v51 = vmax.f32 %v572_v43, 0.0 }
  0xf3   :  { %v664_v54 = vmax.f32 %v436_v46, 0.0  ;;  %v696_v55 = vmax.f32 %v564_v47, 0.0 }
  0xf4   :  { %v1278_v56 = vpack.c.bf16 %v666_v50, %v665_v48  ;;  %v1358_v57 = vpack.c.bf16 %v698_v51, %v697_v49 }
  0xf5   :  { %v1273_v58 = vpack.c.bf16 %v664_v54, %v663_v52  ;;  %v1353_v59 = vpack.c.bf16 %v696_v55, %v695_v53  ;;  %v1493_v60 = vpop.f32.mrb[12].mxu0  ;;  %v1525_v61 = vpop.f32.mrb[12].mxu1 }
  0xf6   :  { %1414 = vst [vmem:[#allocation2 + $0x28] sm:$0xff] %v1278_v56   ;;  %1430 = vst [vmem:[#allocation2 + $0xa8] sm:$0xff] %v1358_v57   ;;  %v457_v62 = vadd.f32 %v1493_v60, %v1770_v38  ;;  %v585_v63 = vadd.f32 %v1525_v61, %v1770_v38  ;;  %v448_v0 = vpop.f32.mrb[13].mxu0  ;;  %v576_v1 = vpop.f32.mrb[13].mxu1 }
  0xf7   :  { %1413 = vst [vmem:[#allocation2 + $0x20] sm:$0xff] %v1273_v58   ;;  %1429 = vst [vmem:[#allocation2 + $0xa0] sm:$0xff] %v1353_v59   ;;  %v449_v2 = vadd.f32 %v1770_v38, %v448_v0  ;;  %v577_v3 = vadd.f32 %v1770_v38, %v576_v1  ;;  %v1494_v4 = vpop.f32.mrb[14].mxu0  ;;  %v1526_v5 = vpop.f32.mrb[14].mxu1 }
  0xf8   :  { %v460_v6 = vadd.f32 %v1494_v4, %v1770_v38  ;;  %v588_v7 = vadd.f32 %v1526_v5, %v1770_v38  ;;  %v451_v8 = vpop.f32.mrb[15].mxu0  ;;  %v579_v9 = vpop.f32.mrb[15].mxu1  ;;  %v669_v12 = vmax.f32 %v457_v62, 0.0  ;;  %v701_v13 = vmax.f32 %v585_v63, 0.0 }
  0xf9   :  { %v452_v10 = vadd.f32 %v1770_v38, %v451_v8  ;;  %v580_v11 = vadd.f32 %v1770_v38, %v579_v9  ;;  %v667_v16 = vmax.f32 %v449_v2, 0.0  ;;  %v699_v17 = vmax.f32 %v577_v3, 0.0 }
  0xfa   :  { %v670_v14 = vmax.f32 %v460_v6, 0.0  ;;  %v702_v15 = vmax.f32 %v588_v7, 0.0 }
  0xfb   :  { %v668_v18 = vmax.f32 %v452_v10, 0.0  ;;  %v700_v19 = vmax.f32 %v580_v11, 0.0 }
  0xfc   :  { %v1288_v20 = vpack.c.bf16 %v670_v14, %v669_v12  ;;  %v1368_v21 = vpack.c.bf16 %v702_v15, %v701_v13 }
  0xfd   :  { %v1283_v22 = vpack.c.bf16 %v668_v18, %v667_v16  ;;  %v1363_v23 = vpack.c.bf16 %v700_v19, %v699_v17  ;;  %v1497_v24 = vpop.f32.mrb[16].mxu0  ;;  %v1529_v25 = vpop.f32.mrb[16].mxu1 }
  0xfe   :  { %1416 = vst [vmem:[#allocation2 + $0x38] sm:$0xff] %v1288_v20   ;;  %1432 = vst [vmem:[#allocation2 + $0xb8] sm:$0xff] %v1368_v21   ;;  %v473_v26 = vadd.f32 %v1497_v24, %v1770_v38  ;;  %v601_v27 = vadd.f32 %v1529_v25, %v1770_v38  ;;  %v464_v28 = vpop.f32.mrb[17].mxu0  ;;  %v592_v29 = vpop.f32.mrb[17].mxu1 }
  0xff   :  { %1415 = vst [vmem:[#allocation2 + $0x30] sm:$0xff] %v1283_v22   ;;  %1431 = vst [vmem:[#allocation2 + $0xb0] sm:$0xff] %v1363_v23   ;;  %v465_v30 = vadd.f32 %v1770_v38, %v464_v28  ;;  %v593_v31 = vadd.f32 %v1770_v38, %v592_v29  ;;  %v1498_v32 = vpop.f32.mrb[18].mxu0  ;;  %v1530_v33 = vpop.f32.mrb[18].mxu1 }
 0x100   :  { %v476_v34 = vadd.f32 %v1498_v32, %v1770_v38  ;;  %v604_v35 = vadd.f32 %v1530_v33, %v1770_v38  ;;  %v467_v36 = vpop.f32.mrb[19].mxu0  ;;  %v595_v37 = vpop.f32.mrb[19].mxu1  ;;  %v673_v41 = vmax.f32 %v473_v26, 0.0  ;;  %v705_v42 = vmax.f32 %v601_v27, 0.0 }
 0x101   :  { %v468_v39 = vadd.f32 %v1770_v38, %v467_v36  ;;  %v596_v40 = vadd.f32 %v1770_v38, %v595_v37  ;;  %v671_v45 = vmax.f32 %v465_v30, 0.0  ;;  %v703_v46 = vmax.f32 %v593_v31, 0.0 }
 0x102   :  { %v674_v43 = vmax.f32 %v476_v34, 0.0  ;;  %v706_v44 = vmax.f32 %v604_v35, 0.0 }
 0x103   :  { %v672_v47 = vmax.f32 %v468_v39, 0.0  ;;  %v704_v48 = vmax.f32 %v596_v40, 0.0 }
 0x104   :  { %v1298_v49 = vpack.c.bf16 %v674_v43, %v673_v41  ;;  %v1378_v50 = vpack.c.bf16 %v706_v44, %v705_v42 }
 0x105   :  { %v1293_v51 = vpack.c.bf16 %v672_v47, %v671_v45  ;;  %v1373_v52 = vpack.c.bf16 %v704_v48, %v703_v46  ;;  %v1501_v53 = vpop.f32.mrb[20].mxu0  ;;  %v1533_v54 = vpop.f32.mrb[20].mxu1 }
 0x106   :  { %1418 = vst [vmem:[#allocation2 + $0x48] sm:$0xff] %v1298_v49   ;;  %1434 = vst [vmem:[#allocation2 + $0xc8] sm:$0xff] %v1378_v50   ;;  %v489_v55 = vadd.f32 %v1501_v53, %v1770_v38  ;;  %v617_v56 = vadd.f32 %v1533_v54, %v1770_v38  ;;  %v480_v57 = vpop.f32.mrb[21].mxu0  ;;  %v608_v58 = vpop.f32.mrb[21].mxu1 }
 0x107   :  { %1417 = vst [vmem:[#allocation2 + $0x40] sm:$0xff] %v1293_v51   ;;  %1433 = vst [vmem:[#allocation2 + $0xc0] sm:$0xff] %v1373_v52   ;;  %v481_v59 = vadd.f32 %v1770_v38, %v480_v57  ;;  %v609_v60 = vadd.f32 %v1770_v38, %v608_v58  ;;  %v1502_v61 = vpop.f32.mrb[22].mxu0  ;;  %v1534_v62 = vpop.f32.mrb[22].mxu1 }
 0x108   :  { %v492_v63 = vadd.f32 %v1502_v61, %v1770_v38  ;;  %v620_v0 = vadd.f32 %v1534_v62, %v1770_v38  ;;  %v483_v1 = vpop.f32.mrb[23].mxu0  ;;  %v611_v2 = vpop.f32.mrb[23].mxu1  ;;  %v677_v5 = vmax.f32 %v489_v55, 0.0  ;;  %v709_v6 = vmax.f32 %v617_v56, 0.0 }
 0x109   :  { %v484_v3 = vadd.f32 %v1770_v38, %v483_v1  ;;  %v612_v4 = vadd.f32 %v1770_v38, %v611_v2  ;;  %v675_v9 = vmax.f32 %v481_v59, 0.0  ;;  %v707_v10 = vmax.f32 %v609_v60, 0.0 }
 0x10a   :  { %v678_v7 = vmax.f32 %v492_v63, 0.0  ;;  %v710_v8 = vmax.f32 %v620_v0, 0.0 }
 0x10b   :  { %v676_v11 = vmax.f32 %v484_v3, 0.0  ;;  %v708_v12 = vmax.f32 %v612_v4, 0.0 }
 0x10c   :  { %v1308_v13 = vpack.c.bf16 %v678_v7, %v677_v5  ;;  %v1388_v14 = vpack.c.bf16 %v710_v8, %v709_v6 }
 0x10d   :  { %v1303_v15 = vpack.c.bf16 %v676_v11, %v675_v9  ;;  %v1383_v16 = vpack.c.bf16 %v708_v12, %v707_v10  ;;  %v1505_v17 = vpop.f32.mrb[24].mxu0  ;;  %v1537_v18 = vpop.f32.mrb[24].mxu1 }
 0x10e   :  { %1420 = vst [vmem:[#allocation2 + $0x58] sm:$0xff] %v1308_v13   ;;  %1436 = vst [vmem:[#allocation2 + $0xd8] sm:$0xff] %v1388_v14   ;;  %v505_v19 = vadd.f32 %v1505_v17, %v1770_v38  ;;  %v633_v20 = vadd.f32 %v1537_v18, %v1770_v38  ;;  %v496_v21 = vpop.f32.mrb[25].mxu0  ;;  %v624_v22 = vpop.f32.mrb[25].mxu1 }
 0x10f   :  { %1419 = vst [vmem:[#allocation2 + $0x50] sm:$0xff] %v1303_v15   ;;  %1435 = vst [vmem:[#allocation2 + $0xd0] sm:$0xff] %v1383_v16   ;;  %v497_v23 = vadd.f32 %v1770_v38, %v496_v21  ;;  %v625_v24 = vadd.f32 %v1770_v38, %v624_v22  ;;  %v1506_v25 = vpop.f32.mrb[26].mxu0  ;;  %v1538_v26 = vpop.f32.mrb[26].mxu1 }
 0x110   :  { %v508_v27 = vadd.f32 %v1506_v25, %v1770_v38  ;;  %v636_v28 = vadd.f32 %v1538_v26, %v1770_v38  ;;  %v499_v29 = vpop.f32.mrb[27].mxu0  ;;  %v627_v30 = vpop.f32.mrb[27].mxu1  ;;  %v681_v33 = vmax.f32 %v505_v19, 0.0  ;;  %v713_v34 = vmax.f32 %v633_v20, 0.0 }
 0x111   :  { %v500_v31 = vadd.f32 %v1770_v38, %v499_v29  ;;  %v628_v32 = vadd.f32 %v1770_v38, %v627_v30  ;;  %v679_v37 = vmax.f32 %v497_v23, 0.0  ;;  %v711_v39 = vmax.f32 %v625_v24, 0.0 }
 0x112   :  { %v682_v35 = vmax.f32 %v508_v27, 0.0  ;;  %v714_v36 = vmax.f32 %v636_v28, 0.0 }
 0x113   :  { %v680_v40 = vmax.f32 %v500_v31, 0.0  ;;  %v712_v41 = vmax.f32 %v628_v32, 0.0 }
 0x114   :  { %v1318_v42 = vpack.c.bf16 %v682_v35, %v681_v33  ;;  %v1398_v43 = vpack.c.bf16 %v714_v36, %v713_v34 }
 0x115   :  { %v1313_v44 = vpack.c.bf16 %v680_v40, %v679_v37  ;;  %v1393_v45 = vpack.c.bf16 %v712_v41, %v711_v39  ;;  %v1509_v46 = vpop.f32.mrb[28].mxu0  ;;  %v1541_v47 = vpop.f32.mrb[28].mxu1 }
 0x116   :  { %1422 = vst [vmem:[#allocation2 + $0x68] sm:$0xff] %v1318_v42   ;;  %1438 = vst [vmem:[#allocation2 + $0xe8] sm:$0xff] %v1398_v43   ;;  %v521_v48 = vadd.f32 %v1509_v46, %v1770_v38  ;;  %v649_v49 = vadd.f32 %v1541_v47, %v1770_v38  ;;  %v512_v50 = vpop.f32.mrb[29].mxu0  ;;  %v640_v51 = vpop.f32.mrb[29].mxu1 }
 0x117   :  { %1421 = vst [vmem:[#allocation2 + $0x60] sm:$0xff] %v1313_v44   ;;  %1437 = vst [vmem:[#allocation2 + $0xe0] sm:$0xff] %v1393_v45   ;;  %v513_v52 = vadd.f32 %v1770_v38, %v512_v50  ;;  %v641_v53 = vadd.f32 %v1770_v38, %v640_v51  ;;  %v1510_v54 = vpop.f32.mrb[30].mxu0  ;;  %v1542_v55 = vpop.f32.mrb[30].mxu1 }
 0x118   :  { %v524_v56 = vadd.f32 %v1510_v54, %v1770_v38  ;;  %v652_v57 = vadd.f32 %v1542_v55, %v1770_v38  ;;  %v515_v58 = vpop.f32.mrb[31].mxu0  ;;  %v643_v59 = vpop.f32.mrb[31].mxu1  ;;  %v685_v62 = vmax.f32 %v521_v48, 0.0  ;;  %v717_v63 = vmax.f32 %v649_v49, 0.0 }
 0x119   :  { %v516_v60 = vadd.f32 %v1770_v38, %v515_v58  ;;  %v644_v61 = vadd.f32 %v1770_v38, %v643_v59  ;;  %v683_v2 = vmax.f32 %v513_v52, 0.0  ;;  %v715_v3 = vmax.f32 %v641_v53, 0.0 }
 0x11a   :  { %v686_v0 = vmax.f32 %v524_v56, 0.0  ;;  %v718_v1 = vmax.f32 %v652_v57, 0.0 }
 0x11b   :  { %v684_v4 = vmax.f32 %v516_v60, 0.0  ;;  %v716_v5 = vmax.f32 %v644_v61, 0.0 }
 0x11c   :  { %v1328_v6 = vpack.c.bf16 %v686_v0, %v685_v62  ;;  %v1408_v7 = vpack.c.bf16 %v718_v1, %v717_v63 }
 0x11d   :  { %v1323_v8 = vpack.c.bf16 %v684_v4, %v683_v2  ;;  %v1403_v9 = vpack.c.bf16 %v716_v5, %v715_v3 }
 0x11e   :  { %1424 = vst [vmem:[#allocation2 + $0x78] sm:$0xff] %v1328_v6   ;;  %1440 = vst [vmem:[#allocation2 + $0xf8] sm:$0xff] %v1408_v7  }
 0x11f   :  { %1423 = vst [vmem:[#allocation2 + $0x70] sm:$0xff] %v1323_v8   ;;  %1439 = vst [vmem:[#allocation2 + $0xf0] sm:$0xff] %v1403_v9  }
 0x120   :  { %1596 = shalt.err (!%p1593_p4)
}
 0x121   :  { %s1597_s28 = scalar_lea.hbm %s1851_s3, 4096 }
 0x122   :  { %p1598_p5 = scmp.ne.s32.totalorder %s1851_s3, %s1597_s28  ;;  %p1601_p6 = scmp.lt.u32.totalorder %s1597_s28, %s1851_s3 }
 0x124   :  { %p1603_p7 = pnand %p1601_p6, %p1598_p5 }
 0x126   :  { %1606 = shalt.err (!%p1603_p7)
}
 0x127   :  { %s1611_s6 = smov 64   ;;  %s1612_s7 = smov 4  }
 0x128   :  { %1050 = dma.vmem_to_hbm [thread:$0]  %s1045_s2, 4096, %s1851_s3, [#allocation3], %s1611_s6, %s1611_s6, %s1612_s7  }
 0x129   :  { %1607 = dma.done.wait [#allocation3], 4096  }
 0x12a   :  { %1608 = vsyncadd [#allocation3], 4294963200 }
 0x12b   :  { %1054 = vsyncpa [#allocation3], 1 }

</bundles_post_ra>
